<compile_context>
chip_gen: v5e
topology: v5e:2x2
jax: 0.10.0
libtpu: 0.0.40
codegen_flags: <defaults>
</compile_context>

<pallas_src>
import jax
import jax.numpy as jnp
import numpy as np
from jax.experimental import pallas as pl
from jax.experimental.pallas import tpu as pltpu


def _round_up(n, m):
    return ((n + m - 1) // m) * m


def pn_kernel(coef_ref, x_ref, o_ref):
    """coef_ref: SMEM (6,) f32 = [c00, c01, c02, c11, c12, c22]
    x_ref: VMEM (2, rt, W) f32 — x_ref[0] is the x0 slab, x_ref[1] the x1 slab
    o_ref: VMEM (rt, W) f32."""
    x0 = x_ref[0]                       # (rt, W) dense slab
    x1 = x_ref[1]                       # (rt, W) dense slab
    c00 = coef_ref[0]
    c01 = coef_ref[1]
    c02 = coef_ref[2]
    c11 = coef_ref[3]
    c12 = coef_ref[4]
    c22 = coef_ref[5]
    # Pure VPU polynomial; scalar coefficients broadcast from SMEM.
    o_ref[...] = x0 * (c00 * x0 + c01 * x1 + c02) + x1 * (c11 * x1 + c12) + c22


def _summed_coefficients(w_stack):
    """Mask each (3,3) to upper-triangular (as the forward does), sum over neurons,
    and extract the 6 polynomial coefficients of z^T W_sum z with z = [x0, x1, 1]."""
    mask = jnp.triu(jnp.ones((3, 3), jnp.float32))
    w_sum = jnp.sum(w_stack.astype(jnp.float32) * mask, axis=0)      # (3, 3)
    return jnp.stack([w_sum[0, 0], w_sum[0, 1], w_sum[0, 2],
                      w_sum[1, 1], w_sum[1, 2], w_sum[2, 2]])        # (6,)


def polynomial_network_forward(x, w_stack, *, r_tile=512, w_lanes=512):
    """x: (B, 2), w_stack: (N, 3, 3) raw weights. Returns (B, 1) f32."""
    assert w_lanes % 128 == 0, "lane width must be a multiple of 128"
    assert r_tile % 8 == 0, "sublane tile must be a multiple of 8"
    B = x.shape[0]
    coefs = _summed_coefficients(w_stack)

    W = w_lanes
    bp = _round_up(B, W)                 # pad only to a lane-width boundary
    R = bp // W                          # dense rows of the (R, W) slab view
    rt = R if R <= r_tile else r_tile    # full-R block for small batches
    grid = pl.cdiv(R, rt)                # ragged last block handled by Pallas masking

    # Features-major, then a free row-major view into sublane+lane dense slabs.
    xt = jnp.transpose(x.astype(jnp.float32))                        # (2, B)
    if bp != B:
        xt = jnp.pad(xt, ((0, 0), (0, bp - B)))                      # fuses with the transpose
    x3 = xt.reshape(2, R, W)                                         # (2, R, W) free view

    out = pl.pallas_call(
        pn_kernel,
        out_shape=jax.ShapeDtypeStruct((R, W), jnp.float32),
        grid_spec=pltpu.PrefetchScalarGridSpec(
            num_scalar_prefetch=0,
            grid=(grid,),
            in_specs=[
                pl.BlockSpec(memory_space=pltpu.MemorySpace.SMEM),   # 6 coefficients
                pl.BlockSpec((2, rt, W), lambda g: (0, g, 0)),       # dense x slab
            ],
            out_specs=pl.BlockSpec((rt, W), lambda g: (g, 0)),       # dense output slab
        ),
        compiler_params=pltpu.CompilerParams(
            # Batch axis is independent per step -> megacore-shardable.
            # (On v7x, pltpu.CORE_PARALLEL could shard DMA issue across both TCs.)
            dimension_semantics=("parallel",),
            # Permit XLA to fuse the transpose/pad producing x3 into the kernel
            # input instead of materializing a second copy of x in HBM.
            allow_input_fusion=[False, True],
        ),
    )(coefs, x3)

    # Free reshape back to a flat batch, drop padded rows, restore (B, 1).
    return out.reshape(bp)[:B].reshape(B, 1)


def reference_forward(x, w_stack):
    """Pure-JAX reference of the PyTorch forward (per-neuron quadratic forms, summed)."""
    mask = jnp.triu(jnp.ones((3, 3), jnp.float32))
    wm = w_stack.astype(jnp.float32) * mask
    B = x.shape[0]
    z = jnp.concatenate([x.astype(jnp.float32), jnp.ones((B, 1), jnp.float32)], axis=1)
    per_neuron = jnp.einsum("bi,nij,bj->bn", z, wm, z)               # (B, N)
    return jnp.sum(per_neuron, axis=1, keepdims=True)                # (B, 1)


def polynomial_network_apply(x, w_stack, *, min_kernel_batch=1024, r_tile=512, w_lanes=512):
    """Dispatcher: for tiny batches the pallas_call launch overhead dwarfs the ~6
    FLOPs/row of work, so use the closed-form plain-JAX path (same math)."""
    if x.shape[0] < min_kernel_batch:
        return reference_forward(x, w_stack)
    return polynomial_network_forward(x, w_stack, r_tile=r_tile, w_lanes=w_lanes)


def init_params(key, n_neurons):
    """Mirror PN_Neuron.__init__: W ~ N(0,1), strict lower triangle zeroed.
    (The forward masks again, exactly like the PyTorch module.)"""
    mask = jnp.triu(jnp.ones((3, 3), jnp.float32))
    keys = jax.random.split(key, n_neurons)
    ws = [jax.random.normal(k, (3, 3), dtype=jnp.float32) * mask for k in keys]
    return jnp.stack(ws, axis=0)                                     # (N, 3, 3)


if __name__ == "__main__":
    key = jax.random.PRNGKey(0)
    kx, kw, kx2 = jax.random.split(key, 3)

    n_neurons = 4
    w_stack = init_params(kw, n_neurons)

    # Small demo batch: single dense slab, one grid step.
    x_small = jax.random.normal(kx, (8, 2), dtype=jnp.float32)
    out_small = jax.block_until_ready(polynomial_network_forward(x_small, w_stack))
    assert out_small.shape == (8, 1)
    np.testing.assert_allclose(np.asarray(out_small),
                               np.asarray(reference_forward(x_small, w_stack)),
                               rtol=1e-5, atol=1e-5)

    # Non-multiple batch with small tiles: multi-step grid + ragged last block.
    x_big = jax.random.normal(kx2, (2500, 2), dtype=jnp.float32)
    out_big = jax.block_until_ready(
        polynomial_network_forward(x_big, w_stack, r_tile=8, w_lanes=128))
    assert out_big.shape == (2500, 1)
    np.testing.assert_allclose(np.asarray(out_big),
                               np.asarray(reference_forward(x_big, w_stack)),
                               rtol=1e-5, atol=1e-5)

    print("KERNEL_OK")
</pallas_src>

<mosaic_0001>
module attributes {stable_mosaic.version = 11 : i64} {
  func.func @pn_kernel(%arg0: i32, %arg1: memref<6xf32, #tpu.memory_space<smem>>, %arg2: memref<2x1x512xf32, #tpu.memory_space<vmem>>, %arg3: memref<1x512xf32, #tpu.memory_space<vmem>>) attributes {dimension_semantics = [#tpu.dimension_semantics<parallel>], iteration_bounds = array<i64: 1>, scalar_prefetch = 0 : i64, scratch_operands = 0 : i64, tpu.core_type = #tpu.core_type<tc>, window_params = [{transform_indices = @transform_0, window_bounds = array<i64: 6>}, {transform_indices = @transform_1, window_bounds = array<i64: 2, 1, 512>}, {transform_indices = @transform_2, window_bounds = array<i64: 1, 512>}]} {
    %c0 = arith.constant 0 : index
    %c0_0 = arith.constant 0 : index
    %c0_1 = arith.constant 0 : index
    %0 = vector.load %arg2[%c0, %c0_0, %c0_1] : memref<2x1x512xf32, #tpu.memory_space<vmem>>, vector<1x1x512xf32>
    %1 = vector.shape_cast %0 : vector<1x1x512xf32> to vector<1x512xf32>
    %c1 = arith.constant 1 : index
    %c0_2 = arith.constant 0 : index
    %c0_3 = arith.constant 0 : index
    %2 = vector.load %arg2[%c1, %c0_2, %c0_3] : memref<2x1x512xf32, #tpu.memory_space<vmem>>, vector<1x1x512xf32>
    %3 = vector.shape_cast %2 : vector<1x1x512xf32> to vector<1x512xf32>
    %c0_4 = arith.constant 0 : index
    %4 = memref.load %arg1[%c0_4] : memref<6xf32, #tpu.memory_space<smem>>
    %c1_5 = arith.constant 1 : index
    %5 = memref.load %arg1[%c1_5] : memref<6xf32, #tpu.memory_space<smem>>
    %c2 = arith.constant 2 : index
    %6 = memref.load %arg1[%c2] : memref<6xf32, #tpu.memory_space<smem>>
    %c3 = arith.constant 3 : index
    %7 = memref.load %arg1[%c3] : memref<6xf32, #tpu.memory_space<smem>>
    %c4 = arith.constant 4 : index
    %8 = memref.load %arg1[%c4] : memref<6xf32, #tpu.memory_space<smem>>
    %c5 = arith.constant 5 : index
    %9 = memref.load %arg1[%c5] : memref<6xf32, #tpu.memory_space<smem>>
    %10 = vector.broadcast %4 : f32 to vector<1x512xf32>
    %11 = arith.mulf %10, %1 : vector<1x512xf32>
    %12 = vector.broadcast %5 : f32 to vector<1x512xf32>
    %13 = arith.mulf %12, %3 : vector<1x512xf32>
    %14 = arith.addf %11, %13 : vector<1x512xf32>
    %15 = vector.broadcast %6 : f32 to vector<1x512xf32>
    %16 = arith.addf %14, %15 : vector<1x512xf32>
    %17 = arith.mulf %1, %16 : vector<1x512xf32>
    %18 = vector.broadcast %7 : f32 to vector<1x512xf32>
    %19 = arith.mulf %18, %3 : vector<1x512xf32>
    %20 = vector.broadcast %8 : f32 to vector<1x512xf32>
    %21 = arith.addf %19, %20 : vector<1x512xf32>
    %22 = arith.mulf %3, %21 : vector<1x512xf32>
    %23 = arith.addf %17, %22 : vector<1x512xf32>
    %24 = vector.broadcast %9 : f32 to vector<1x512xf32>
    %25 = arith.addf %23, %24 : vector<1x512xf32>
    %c0_6 = arith.constant 0 : index
    %c0_7 = arith.constant 0 : index
    %26 = vector.load %arg3[%c0_6, %c0_7] : memref<1x512xf32, #tpu.memory_space<vmem>>, vector<1x512xf32>
    tpu.vector_store %arg3[%c0_6, %c0_7], %25 {strides = array<i32>} : memref<1x512xf32, #tpu.memory_space<vmem>>, vector<1x512xf32>,
    return
  }
  func.func @transform_0(%arg0: i32) -> i32 {
    %c0_i32 = arith.constant 0 : i32
    %c0_i32_0 = arith.constant 0 : i32
    return %c0_i32 : i32
  }
  func.func @transform_1(%arg0: i32) -> (i32, i32, i32) {
    %c0_i32 = arith.constant 0 : i32
    %c0_i32_0 = arith.constant 0 : i32
    %c0_i32_1 = arith.constant 0 : i32
    return %c0_i32, %arg0, %c0_i32_0 : i32, i32, i32
  }
  func.func @transform_2(%arg0: i32) -> (i32, i32) {
    %c0_i32 = arith.constant 0 : i32
    %c0_i32_0 = arith.constant 0 : i32
    return %arg0, %c0_i32 : i32, i32
  }
}

</mosaic_0001>

<bundles_post_ra>
// kernel: tpu_custom_call.1
= control target key start
LH: loop header
LB: loop body
LE: loop exit
PB: predicated region body
PF: predicated region fallthrough
CT: control target
= control target key end

     0   :  { %7 = vsyncpa [#allocation5], 0  ;;  %s194_s0 = inlined_call_operand.hbm [shape: f32[6], index: 0, kind: input, shape index: {}]   ;;  %s195_s1 = inlined_call_operand.hbm [shape: f32[2,1,512], index: 1, kind: input, shape index: {}]   ;;  %s196_s2 = inlined_call_operand.hbm [shape: f32[1,512], index: 2, kind: output, shape index: {}]  }
   0x1   :  { %8 = vsyncpa [#allocation3], 0 }
   0x2   :  { %9 = vsyncpa [#allocation4], 0  ;;  %s15_s11 = sshll.u32 %s194_s0, 4  ;;  %s23_s14 = sshll.u32 %s195_s1, 4  ;;  %s16_s11 = int_to_ptr.hbm [resolvable:$true] %s15_s11  ;;  %s24_s14 = int_to_ptr.hbm [resolvable:$true] %s23_s14 }
   0x3   :  { %s165_s15 = smov [#allocation2]   ;;  %s166_s16 = smov [#allocation6]  }
   0x4   :  { %18 = dma.hbm_to_smem %s16_s11, 16, %s165_s15, [#allocation5]  }
   0x5   :  { %s25_s17 = sshll.u32 %s166_s16, 4  ;;  %s167_s18 = smov 64   ;;  %s26_s17 = int_to_ptr.vmem [resolvable:$true] %s25_s17 }
   0x6   :  { %s168_s19 = smov 4  }
   0x7   :  { %31 = dma.hbm_to_vmem [thread:$0]  %s24_s14, 128, %s26_s17, [#allocation3], %s167_s18, %s167_s18, %s168_s19  }
   0x8   :  { %159 = dma.done.wait [#allocation5], 16  }
   0x9   :  { %160 = vsyncadd [#allocation5], 4294967280 }
   0xa   :  { %161 = dma.done.wait [#allocation3], 128  }
   0xb   :  { %162 = vsyncadd [#allocation3], 4294967168 }
   0xc   :  { %40 = sfence }
   0xd   :  { %s44_s0 = sld [smem:[#allocation2]]  ;;  %v41_v0 = vld [vmem:[#allocation6] sm:$0xf]  ;;  %v43_v1 = vld [vmem:[#allocation6 + $0x4] sm:$0xf]  ;;  %v66_v13 = vlaneseq  ;;  %s169_s24 = smov [#allocation7]  }
   0xe   :  { %s89_s20 = sld [smem:[#allocation2 + $0x1]]  ;;  %s76_s25 = sshll.u32 %s169_s24, 4  ;;  %s77_s25 = int_to_ptr.vmem [resolvable:$true] %s76_s25 }
   0xf   :  { %s90_s21 = sld [smem:[#allocation2 + $0x2]]  ;;  %s78_s28 = sshll.u32 %s196_s2, 4  ;;  %vm68_vm0 = vcmp.lt.s32.totalorder %v66_v13, 512  ;;  %s79_s28 = int_to_ptr.hbm [resolvable:$true] %s78_s28 }
  0x10   :  { %s91_s22 = sld [smem:[#allocation2 + $0x3]] }
  0x11   :  { %s92_s1 = sld [smem:[#allocation2 + $0x4]] }
  0x12   :  { %s93_s23 = sld [smem:[#allocation2 + $0x5]] }
  0x13   :  { %v50_v2 = vstv %s44_s0 }
  0x14   :  { %v51_v3 = vmul.f32 %v50_v2, %v41_v0  ;;  %v52_v4 = vstv %s89_s20 }
  0x15   :  { %v53_v5 = vmul.f32 %v52_v4, %v43_v1  ;;  %v55_v6 = vstv %s90_s21 }
  0x16   :  { %v58_v7 = vstv %s91_s22 }
  0x17   :  { %v54_v8 = vadd.f32 %v53_v5, %v51_v3  ;;  %v59_v9 = vmul.f32 %v58_v7, %v43_v1  ;;  %v60_v10 = vstv %s92_s1 }
  0x18   :  { %v64_v16 = vstv %s93_s23 }
  0x19   :  { %v56_v11 = vadd.f32 %v55_v6, %v54_v8  ;;  %v61_v12 = vadd.f32 %v60_v10, %v59_v9 }
  0x1b   :  { %v57_v14 = vmul.f32 %v56_v11, %v41_v0  ;;  %v62_v15 = vmul.f32 %v61_v12, %v43_v1 }
  0x1d   :  { %v63_v17 = vadd.f32 %v62_v15, %v57_v14 }
  0x1f   :  { %v65_v18 = vadd.f32 %v64_v16, %v63_v17 }
  0x21   :  { %70 = vst.msk [vmem:[#allocation7] sm:$0xf] %vm68_vm0, %v65_v18 }
  0x22   :  { %81 = dma.vmem_to_hbm [thread:$0]  %s77_s25, 64, %s79_s28, [#allocation4]  }
  0x23   :  { %163 = dma.done.wait [#allocation4], 64  }
  0x24   :  { %164 = vsyncadd [#allocation4], 4294967232 }
  0x25   :  { %86 = vsyncpa [#allocation3], 1 }
  0x26   :  { %87 = vsyncpa [#allocation4], 1 }
  0x27   :  { %88 = vsyncpa [#allocation5], 1 }

</bundles_post_ra>
